<compile_context>
chip_gen: v7x
topology: tpu7x:2x2x1
jax: 0.10.0
libtpu: 0.0.40
codegen_flags: <defaults>
</compile_context>

<pallas_src>
import functools

import jax
import jax.numpy as jnp
from jax import lax
from jax.experimental import pallas as pl
from jax.experimental.pallas import tpu as pltpu


def _round_up(x, m):
    return ((x + m - 1) // m) * m


# ---------------------------------------------------------------------------
# Forward evaluation kernel: y = relu(h @ W1 + b1) @ W2 + b2 for one batch tile
#   h tile: (Bt, 2)        -> layer 1 as two VPU broadcast-FMAs (K=2, no MXU)
#   hidden: (Bt, 128) f32  -> lane-dense vregs, padded lanes exactly zero
#   output: only the 2 real lanes are stored (out array is (B, 2))
# ---------------------------------------------------------------------------
def _odefunc_fwd_kernel(h_ref, w1_ref, b1_ref, w2_ref, b2_ref, o_ref):
    h = h_ref[...]                                               # (Bt, 2)
    z = h[:, 0:1] * w1_ref[0:1, :] + h[:, 1:2] * w1_ref[1:2, :] + b1_ref[...]
    a = jnp.maximum(z, 0.0)                                      # (Bt, 128)
    y = jnp.dot(a, w2_ref[...], preferred_element_type=jnp.float32) + b2_ref[...]
    o_ref[...] = y[:, : o_ref.shape[-1]].astype(o_ref.dtype)    # (Bt, 2) store


def odefunc_forward(t, h, padded_params, *, out_dim=2, batch_tile=1024):
    """Pallas equivalent of ODEFunc.forward(t, h). `t` is unused (as in PyTorch)."""
    del t  # unused, matches the reference module
    w1p, _, b1p, w2p, b2p = padded_params
    B, in_dim = h.shape
    hp_w = w1p.shape[1]                        # padded hidden width (128)
    op_w = w2p.shape[1]                        # padded layer-2 width (128)

    Bp = _round_up(max(B, 8), 8)               # only pad to sublane multiple
    tile = min(Bp, _round_up(batch_tile, 8))
    h_pad = h if Bp == B else jnp.pad(h, ((0, Bp - B), (0, 0)))
    grid = (pl.cdiv(Bp, tile),)                # ragged last tile is masked

    out = pl.pallas_call(
        _odefunc_fwd_kernel,
        out_shape=jax.ShapeDtypeStruct((Bp, out_dim), h.dtype),
        grid=grid,
        in_specs=[
            pl.BlockSpec((tile, in_dim), lambda i: (i, 0)),
            # Constant block index -> weights DMA'd once, stay resident in VMEM.
            pl.BlockSpec((in_dim, hp_w), lambda i: (0, 0)),
            pl.BlockSpec((1, hp_w), lambda i: (0, 0)),
            pl.BlockSpec((hp_w, op_w), lambda i: (0, 0)),
            pl.BlockSpec((1, op_w), lambda i: (0, 0)),
        ],
        out_specs=pl.BlockSpec((tile, out_dim), lambda i: (i, 0)),
        compiler_params=pltpu.CompilerParams(
            dimension_semantics=("parallel",)),
    )(h_pad, w1p, b1p, w2p, b2p)
    return out[:B]


# ---------------------------------------------------------------------------
# Fused RK4 integrator: all steps/stages in ONE pallas_call per batch tile.
# State stays lane-padded (tile, 128) in vregs/VMEM for the whole solve; both
# layers are weight-resident MXU matmuls; the time loop is unrolled; dt comes
# from SMEM so changing the step size does not trigger a recompile.
# ---------------------------------------------------------------------------
def _odefunc_rk4_kernel(dt_ref, h0_ref, w1_ref, b1_ref, w2_ref, b2_ref, o_ref,
                        *, num_steps, unroll):
    dt = dt_ref[0]
    w1 = w1_ref[...]          # (128, 128), rows 2.. are zero
    b1 = b1_ref[...]
    w2 = w2_ref[...]          # (128, 128), cols 2.. are zero
    b2 = b2_ref[...]

    def f(h):  # h: (tile, 128); only lanes 0..1 carry real state
        z = jnp.dot(h, w1, preferred_element_type=jnp.float32) + b1
        a = jnp.maximum(z, 0.0)
        return jnp.dot(a, w2, preferred_element_type=jnp.float32) + b2

    def step(_, h):
        k1 = f(h)
        k2 = f(h + (0.5 * dt) * k1)
        k3 = f(h + (0.5 * dt) * k2)
        k4 = f(h + dt * k3)
        return h + (dt / 6.0) * (k1 + 2.0 * k2 + 2.0 * k3 + k4)

    h = h0_ref[...].astype(jnp.float32)
    h = lax.fori_loop(0, num_steps, step, h, unroll=unroll)
    o_ref[...] = h[:, : o_ref.shape[-1]].astype(o_ref.dtype)


def odefunc_rk4_solve(h0, padded_params, *, dt, num_steps, out_dim=2,
                      batch_tile=256):
    _, w1sq, b1p, w2p, b2p = padded_params
    B, in_dim = h0.shape
    width = w2p.shape[1]                      # 128
    Bp = _round_up(max(B, 8), 8)
    tile = min(Bp, _round_up(batch_tile, 8))
    Bt = _round_up(Bp, tile)                  # pad to full tiles (zeros)
    h0_pad = jnp.zeros((Bt, width), h0.dtype).at[:B, :in_dim].set(h0)
    dt_arr = jnp.asarray([dt], dtype=jnp.float32)

    num_steps = int(num_steps)
    unroll = True if num_steps <= 32 else 4
    kernel = functools.partial(_odefunc_rk4_kernel,
                               num_steps=num_steps, unroll=unroll)

    out = pl.pallas_call(
        kernel,
        out_shape=jax.ShapeDtypeStruct((Bt, out_dim), h0.dtype),
        grid=(Bt // tile,),
        in_specs=[
            pl.BlockSpec(memory_space=pltpu.MemorySpace.SMEM),   # dt scalar
            pl.BlockSpec((tile, width), lambda i: (i, 0)),       # h0 tile
            pl.BlockSpec((width, width), lambda i: (0, 0)),      # W1 (square)
            pl.BlockSpec((1, width), lambda i: (0, 0)),          # b1
            pl.BlockSpec((width, width), lambda i: (0, 0)),      # W2
            pl.BlockSpec((1, width), lambda i: (0, 0)),          # b2
        ],
        out_specs=pl.BlockSpec((tile, out_dim), lambda i: (i, 0)),
        compiler_params=pltpu.CompilerParams(
            dimension_semantics=("parallel",)),
    )(dt_arr, h0_pad, w1sq, b1p, w2p, b2p)
    return out[:B]


# ---------------------------------------------------------------------------
# Parameters
# ---------------------------------------------------------------------------
def init_params(key, in_dim=2, hidden_dim=50, out_dim=2, dtype=jnp.float32):
    """nn.Linear-style init U(-1/sqrt(fan_in), 1/sqrt(fan_in)); weights stored
    transposed relative to PyTorch so the math is y = h @ W + b."""
    k1, k2, k3, k4 = jax.random.split(key, 4)
    bound1 = 1.0 / jnp.sqrt(in_dim)
    bound2 = 1.0 / jnp.sqrt(hidden_dim)
    w1 = jax.random.uniform(k1, (in_dim, hidden_dim), dtype, -bound1, bound1)
    b1 = jax.random.uniform(k2, (1, hidden_dim), dtype, -bound1, bound1)
    w2 = jax.random.uniform(k3, (hidden_dim, out_dim), dtype, -bound2, bound2)
    b2 = jax.random.uniform(k4, (1, out_dim), dtype, -bound2, bound2)
    return w1, b1, w2, b2


def pad_params(w1, b1, w2, b2, hidden_pad=128, out_pad=128):
    """Zero-pad to lane-dense widths.  Returns (w1p, w1sq, b1p, w2p, b2p):
    w1p is (in_dim, 128) for the VPU forward path, w1sq is (128, 128) with
    zero rows >= in_dim for the MXU RK4 path.  Padded entries are exactly 0."""
    in_dim, hidden = w1.shape
    out_dim = w2.shape[1]
    w1p = jnp.zeros((in_dim, hidden_pad), w1.dtype).at[:, :hidden].set(w1)
    w1sq = jnp.zeros((hidden_pad, hidden_pad), w1.dtype).at[:in_dim, :hidden].set(w1)
    b1p = jnp.zeros((1, hidden_pad), b1.dtype).at[:, :hidden].set(b1.reshape(1, -1))
    w2p = jnp.zeros((hidden_pad, out_pad), w2.dtype).at[:hidden, :out_dim].set(w2)
    b2p = jnp.zeros((1, out_pad), b2.dtype).at[:, :out_dim].set(b2.reshape(1, -1))
    return w1p, w1sq, b1p, w2p, b2p


if __name__ == "__main__":
    key = jax.random.PRNGKey(0)
    k_params, k_h = jax.random.split(key)

    w1, b1, w2, b2 = init_params(k_params)
    params = pad_params(w1, b1, w2, b2)

    def ref_forward(x):
        return jnp.maximum(x @ w1 + b1, 0.0) @ w2 + b2

    t = jnp.float32(0.0)  # ignored, mirrors ODEFunc.forward(t, h)

    # 1) small batch (single-tile path)
    h = jax.random.normal(k_h, (8, 2), dtype=jnp.float32)
    out = jax.block_until_ready(odefunc_forward(t, h, params))
    assert out.shape == (8, 2)
    assert jnp.allclose(out, ref_forward(h), atol=1e-3, rtol=1e-3)

    # 2) ragged small batch (exercises sublane padding + slice-back)
    h5 = jax.random.normal(jax.random.PRNGKey(2), (5, 2), dtype=jnp.float32)
    out5 = jax.block_until_ready(odefunc_forward(t, h5, params))
    assert out5.shape == (5, 2)
    assert jnp.allclose(out5, ref_forward(h5), atol=1e-3, rtol=1e-3)

    # 3) multi-tile batch with a ragged (masked) last tile / parallel grid axis
    hb = jax.random.normal(jax.random.PRNGKey(1), (300, 2), dtype=jnp.float32)
    outb = jax.block_until_ready(odefunc_forward(t, hb, params, batch_tile=128))
    assert outb.shape == (300, 2)
    assert jnp.allclose(outb, ref_forward(hb), atol=1e-3, rtol=1e-3)

    # 4) fused RK4 solve (all integrator evaluations in one pallas_call)
    dt, steps = 0.05, 20
    traj = jax.block_until_ready(odefunc_rk4_solve(h, params, dt=dt, num_steps=steps))

    def ref_rk4(h0):
        def step(_, x):
            k1 = ref_forward(x)
            k2 = ref_forward(x + 0.5 * dt * k1)
            k3 = ref_forward(x + 0.5 * dt * k2)
            k4 = ref_forward(x + dt * k3)
            return x + (dt / 6.0) * (k1 + 2.0 * k2 + 2.0 * k3 + k4)
        return lax.fori_loop(0, steps, step, h0)

    assert traj.shape == (8, 2)
    assert jnp.allclose(traj, ref_rk4(h), atol=5e-3, rtol=5e-3)

    # 5) fused RK4 with a batch grid axis (megacore path on v7x)
    h20 = jax.random.normal(jax.random.PRNGKey(3), (20, 2), dtype=jnp.float32)
    traj20 = jax.block_until_ready(
        odefunc_rk4_solve(h20, params, dt=dt, num_steps=steps, batch_tile=8))
    assert traj20.shape == (20, 2)
    assert jnp.allclose(traj20, ref_rk4(h20), atol=5e-3, rtol=5e-3)

    print("KERNEL_OK")
</pallas_src>

<mosaic_0001>
module attributes {stable_mosaic.version = 11 : i64} {
  func.func @_odefunc_fwd_kernel(%arg0: i32, %arg1: memref<8x2xf32, #tpu.memory_space<vmem>>, %arg2: memref<2x128xf32, #tpu.memory_space<vmem>>, %arg3: memref<1x128xf32, #tpu.memory_space<vmem>>, %arg4: memref<128x128xf32, #tpu.memory_space<vmem>>, %arg5: memref<1x128xf32, #tpu.memory_space<vmem>>, %arg6: memref<8x2xf32, #tpu.memory_space<vmem>>) attributes {dimension_semantics = [#tpu.dimension_semantics<parallel>], iteration_bounds = array<i64: 1>, scalar_prefetch = 0 : i64, scratch_operands = 0 : i64, tpu.core_type = #tpu.core_type<tc>, window_params = [{transform_indices = @transform_0, window_bounds = array<i64: 8, 2>}, {pipeline_mode = #tpu.pipeline_mode<synchronous>, transform_indices = @transform_1, window_bounds = array<i64: 2, 128>}, {pipeline_mode = #tpu.pipeline_mode<synchronous>, transform_indices = @transform_2, window_bounds = array<i64: 1, 128>}, {pipeline_mode = #tpu.pipeline_mode<synchronous>, transform_indices = @transform_3, window_bounds = array<i64: 128, 128>}, {pipeline_mode = #tpu.pipeline_mode<synchronous>, transform_indices = @transform_4, window_bounds = array<i64: 1, 128>}, {transform_indices = @transform_5, window_bounds = array<i64: 8, 2>}]} {
    %c0 = arith.constant 0 : index
    %c0_0 = arith.constant 0 : index
    %0 = vector.load %arg1[%c0, %c0_0] : memref<8x2xf32, #tpu.memory_space<vmem>>, vector<8x2xf32>
    %1 = vector.extract_strided_slice %0 {offsets = [0, 0], sizes = [8, 1], strides = [1, 1]} : vector<8x2xf32> to vector<8x1xf32>
    %c0_1 = arith.constant 0 : index
    %c0_2 = arith.constant 0 : index
    %2 = vector.load %arg2[%c0_1, %c0_2] : memref<2x128xf32, #tpu.memory_space<vmem>>, vector<1x128xf32>
    %3 = vector.broadcast %1 : vector<8x1xf32> to vector<8x128xf32>
    %4 = vector.broadcast %2 : vector<1x128xf32> to vector<8x128xf32>
    %5 = arith.mulf %3, %4 : vector<8x128xf32>
    %6 = vector.extract_strided_slice %0 {offsets = [0, 1], sizes = [8, 1], strides = [1, 1]} : vector<8x2xf32> to vector<8x1xf32>
    %c1 = arith.constant 1 : index
    %c0_3 = arith.constant 0 : index
    %7 = vector.load %arg2[%c1, %c0_3] : memref<2x128xf32, #tpu.memory_space<vmem>>, vector<1x128xf32>
    %8 = vector.broadcast %6 : vector<8x1xf32> to vector<8x128xf32>
    %9 = vector.broadcast %7 : vector<1x128xf32> to vector<8x128xf32>
    %10 = arith.mulf %8, %9 : vector<8x128xf32>
    %11 = arith.addf %5, %10 : vector<8x128xf32>
    %c0_4 = arith.constant 0 : index
    %c0_5 = arith.constant 0 : index
    %12 = vector.load %arg3[%c0_4, %c0_5] : memref<1x128xf32, #tpu.memory_space<vmem>>, vector<1x128xf32>
    %13 = vector.broadcast %12 : vector<1x128xf32> to vector<8x128xf32>
    %14 = arith.addf %11, %13 : vector<8x128xf32>
    %cst = arith.constant 0.000000e+00 : f32
    %15 = vector.broadcast %cst : f32 to vector<8x128xf32>
    %16 = arith.maximumf %14, %15 : vector<8x128xf32>
    %c0_6 = arith.constant 0 : index
    %c0_7 = arith.constant 0 : index
    %17 = vector.load %arg4[%c0_6, %c0_7] : memref<128x128xf32, #tpu.memory_space<vmem>>, vector<128x128xf32>
    %cst_8 = arith.constant dense<0.000000e+00> : vector<8x128xf32>
    %18 = tpu.matmul %16, %17, %cst_8 {dimension_numbers = #tpu.dot_dimension_numbers<[1], [0], [0], [1], [0, 0, 1, 1], [], []>} : vector<8x128xf32>, vector<128x128xf32>, vector<8x128xf32> -> vector<8x128xf32>
    %c0_9 = arith.constant 0 : index
    %c0_10 = arith.constant 0 : index
    %19 = vector.load %arg5[%c0_9, %c0_10] : memref<1x128xf32, #tpu.memory_space<vmem>>, vector<1x128xf32>
    %20 = vector.broadcast %19 : vector<1x128xf32> to vector<8x128xf32>
    %21 = arith.addf %18, %20 : vector<8x128xf32>
    %22 = vector.extract_strided_slice %21 {offsets = [0, 0], sizes = [8, 2], strides = [1, 1]} : vector<8x128xf32> to vector<8x2xf32>
    %c0_11 = arith.constant 0 : index
    %c0_12 = arith.constant 0 : index
    %23 = vector.load %arg6[%c0_11, %c0_12] : memref<8x2xf32, #tpu.memory_space<vmem>>, vector<8x2xf32>
    tpu.vector_store %arg6[%c0_11, %c0_12], %22 {strides = array<i32>} : memref<8x2xf32, #tpu.memory_space<vmem>>, vector<8x2xf32>,
    return
  }
  func.func @transform_0(%arg0: i32) -> (i32, i32) {
    %c0_i32 = arith.constant 0 : i32
    %c0_i32_0 = arith.constant 0 : i32
    return %arg0, %c0_i32 : i32, i32
  }
  func.func @transform_1(%arg0: i32) -> (i32, i32) {
    %c0_i32 = arith.constant 0 : i32
    %c0_i32_0 = arith.constant 0 : i32
    %c0_i32_1 = arith.constant 0 : i32
    return %c0_i32, %c0_i32_0 : i32, i32
  }
  func.func @transform_2(%arg0: i32) -> (i32, i32) {
    %c0_i32 = arith.constant 0 : i32
    %c0_i32_0 = arith.constant 0 : i32
    %c0_i32_1 = arith.constant 0 : i32
    return %c0_i32, %c0_i32_0 : i32, i32
  }
  func.func @transform_3(%arg0: i32) -> (i32, i32) {
    %c0_i32 = arith.constant 0 : i32
    %c0_i32_0 = arith.constant 0 : i32
    %c0_i32_1 = arith.constant 0 : i32
    return %c0_i32, %c0_i32_0 : i32, i32
  }
  func.func @transform_4(%arg0: i32) -> (i32, i32) {
    %c0_i32 = arith.constant 0 : i32
    %c0_i32_0 = arith.constant 0 : i32
    %c0_i32_1 = arith.constant 0 : i32
    return %c0_i32, %c0_i32_0 : i32, i32
  }
  func.func @transform_5(%arg0: i32) -> (i32, i32) {
    %c0_i32 = arith.constant 0 : i32
    %c0_i32_0 = arith.constant 0 : i32
    return %arg0, %c0_i32 : i32, i32
  }
}

</mosaic_0001>

<bundles_post_ra>
// kernel: tpu_custom_call.1
= control target key start
LH: loop header
LB: loop body
LE: loop exit
PB: predicated region body
PF: predicated region fallthrough
CT: control target
= control target key end

     0   :  { %10 = vsyncpa [#allocation3], 0  ;;  %s280_s18 = smov [#allocation2]   ;;  %s348_s0 = inlined_call_operand.vmem [shape: f32[8,2], index: 0, kind: input, shape index: {}]   ;;  %s349_s1 = inlined_call_operand.vmem [shape: f32[2,128], index: 1, kind: input, shape index: {}]   ;;  %s350_s2 = inlined_call_operand.vmem [shape: f32[1,128], index: 2, kind: input, shape index: {}]   ;;  %s351_s3 = inlined_call_operand.hbm [shape: f32[128,128], index: 3, kind: input, shape index: {}]   ;;  %s352_s4 = inlined_call_operand.vmem [shape: f32[1,128], index: 4, kind: input, shape index: {}]   ;;  %s353_s5 = inlined_call_operand.vmem [shape: f32[8,2], index: 5, kind: output, shape index: {}]  }
   0x1   :  { %s22_s19 = sshll.u32 %s280_s18, 4  ;;  %s256_s22 = scalar_lea.hbm %s351_s3, 2048  ;;  %s23_s19 = int_to_ptr.vmem [resolvable:$true] %s22_s19 }
   0x2   :  { %p257_p0 = scmp.ne.s32.totalorder %s351_s3, %s256_s22  ;;  %p260_p1 = scmp.lt.u32.totalorder %s256_s22, %s351_s3 }
   0x4   :  { %p262_p2 = pnand %p260_p1, %p257_p0 }
   0x6   :  { %265 = shalt.err (!%p262_p2)
}
   0x7   :  { %s266_s27 = scalar_lea.vmem %s23_s19, 2048  ;;  %p271_p4 = scmp.lt.s32.totalorder %s23_s19, %s23_s19 }
   0x8   :  { %p267_p3 = scmp.ne.s32.totalorder %s23_s19, %s266_s27  ;;  %p272_p5 = scmp.lt.s32.totalorder %s266_s27, %s266_s27 }
   0xa   :  { %p273_p6 = por %p272_p5, %p271_p4 }
   0xc   :  { %p274_p7 = pnand %p273_p6, %p267_p3 }
   0xe   :  { %277 = shalt.err (!%p274_p7)
}
   0xf   :  { %s281_s28 = smov 128   ;;  %s282_s29 = smov 8  }
  0x10   :  { %28 = dma.hbm_to_vmem [thread:$0]  %s351_s3, 2048, %s23_s19, [#allocation3], %s281_s28, %s281_s28, %s282_s29  }
  0x11   :  { %278 = dma.done.wait [#allocation3], 2048  }
  0x12   :  { %279 = vsyncadd [#allocation3], 4294965248  ;;  %v283_v0 = vmov 0   ;;  %v284_v1 = vmov 0.0|0.0   ;;  %v34_v2 = vld [vmem:[%s348_s0] sm:$0xff]  ;;  %v67_v4 = vld [vmem:[#allocation2 + $0x8] sm:$0xff] }
  0x13   :  { %254 = vset.pattern.permute.xlu0 %v283_v0  ;;  %222 = vmatprep.subr.bf16.mxu0 %v284_v1  ;;  %v66_v3 = vld [vmem:[#allocation2] sm:$0xff]  ;;  %v68_v6 = vld [vmem:[#allocation2 + $0x10] sm:$0xff]  ;;  %v69_v7 = vld [vmem:[#allocation2 + $0x18] sm:$0xff]  ;;  %v285_v11 = vmov 1   ;;  %vm286_vm0 = vmmov 0   ;;  %v287_v15 = vmov 0.0  }
  0x14   :  { %38 = vperm.xlu0 %254, %v34_v2   ;;  %v223_v5 = vpack.c.bf16 %v67_v4, %v66_v3  ;;  %v226_v8 = vpack.c.bf16 %v69_v7, %v68_v6  ;;  %v70_v9 = vld [vmem:[#allocation2 + $0x20] sm:$0xff]  ;;  %v71_v10 = vld [vmem:[#allocation2 + $0x28] sm:$0xff]  ;;  %v72_v13 = vld [vmem:[#allocation2 + $0x30] sm:$0xff]  ;;  %219 = vmatprep.mubr.msk.f32.mxu0 %vm286_vm0, %v287_v15  ;;  %vm159_vm1 = vcmask 15360  }
  0x15   :  { %v229_v12 = vpack.c.bf16 %v71_v10, %v70_v9  ;;  %v73_v14 = vld [vmem:[#allocation2 + $0x38] sm:$0xff]  ;;  %v74_v17 = vld [vmem:[#allocation2 + $0x40] sm:$0xff]  ;;  %v75_v18 = vld [vmem:[#allocation2 + $0x48] sm:$0xff] }
  0x16   :  { %224 = vmatpush3.bf16.msra.mxu0 %v223_v5  ;;  %v232_v16 = vpack.c.bf16 %v73_v14, %v72_v13  ;;  %v235_v19 = vpack.c.bf16 %v75_v18, %v74_v17  ;;  %v76_v20 = vld [vmem:[#allocation2 + $0x50] sm:$0xff]  ;;  %v77_v21 = vld [vmem:[#allocation2 + $0x58] sm:$0xff]  ;;  %v78_v23 = vld [vmem:[#allocation2 + $0x60] sm:$0xff] }
  0x17   :  { %225 = vmatprep.subr.bf16.mxu0 %v284_v1  ;;  %v238_v22 = vpack.c.bf16 %v77_v21, %v76_v20  ;;  %v79_v24 = vld [vmem:[#allocation2 + $0x68] sm:$0xff]  ;;  %v80_v26 = vld [vmem:[#allocation2 + $0x70] sm:$0xff]  ;;  %v81_v27 = vld [vmem:[#allocation2 + $0x78] sm:$0xff] }
  0x18   :  { %255 = vset.pattern.permute.xlu0 %v285_v11  ;;  %v241_v25 = vpack.c.bf16 %v79_v24, %v78_v23  ;;  %v244_v28 = vpack.c.bf16 %v81_v27, %v80_v26  ;;  %v166_v30 = vld [vmem:[%s349_s1] ss:$0 sm:$0xff]  ;;  %v167_v31 = vld [vmem:[%s349_s1 + $0x1] ss:$0 sm:$0xff] }
  0x19   :  { %48 = vperm.xlu0 %255, %v34_v2   ;;  %v168_v35 = vld [vmem:[%s350_s2] ss:$0 sm:$0xff] }
  0x1a   :  { %227 = vmatpush3.bf16.msra.mxu0 %v226_v8  ;;  %v169_v39 = vld [vmem:[%s352_s4] ss:$0 sm:$0xff] }
  0x1b   :  { %228 = vmatprep.subr.bf16.mxu0 %v284_v1 }
  0x1e   :  { %230 = vmatpush3.bf16.msra.mxu0 %v229_v12 }
  0x1f   :  { %231 = vmatprep.subr.bf16.mxu0 %v284_v1 }
  0x22   :  { %233 = vmatpush3.bf16.msra.mxu0 %v232_v16 }
  0x23   :  { %234 = vmatprep.subr.bf16.mxu0 %v284_v1 }
  0x26   :  { %236 = vmatpush3.bf16.msra.mxu0 %v235_v19 }
  0x27   :  { %237 = vmatprep.subr.bf16.mxu0 %v284_v1 }
  0x2a   :  { %239 = vmatpush3.bf16.msra.mxu0 %v238_v22 }
  0x2b   :  { %240 = vmatprep.subr.bf16.mxu0 %v284_v1 }
  0x2e   :  { %242 = vmatpush3.bf16.msra.mxu0 %v241_v25 }
  0x2f   :  { %243 = vmatprep.subr.bf16.mxu0 %v284_v1 }
  0x32   :  { %245 = vmatpush3.bf16.msra.mxu0 %v244_v28 }
  0x93   :  { %v39_v29 = vpop.permute.xlu0 %38 }
  0x94   :  { %v45_v33 = vmul.f32 %v166_v30, %v39_v29 }
  0x98   :  { %v49_v32 = vpop.permute.xlu0 %48 }
  0x99   :  { %v55_v34 = vmul.f32 %v167_v31, %v49_v32 }
  0x9b   :  { %v56_v36 = vadd.f32 %v55_v34, %v45_v33 }
  0x9d   :  { %v64_v37 = vadd.f32 %v168_v35, %v56_v36 }
  0x9f   :  { %v65_v38 = vmax.f32 %v64_v37, 0.0 }
  0xa1   :  { %220 = vmatmul.mubr.f32.vlgmr.msra.gmra.mrb[0].mxu0 %v65_v38 }
 0x174   :  { %v155_v40 = vpop.f32.mrb[0].mxu0 }
 0x175   :  { %v156_v41 = vadd.f32 %v169_v39, %v155_v40  ;;  %v221_v42 = vpop.f32.mrb[1].mxu0 }
 0x177   :  { %160 = vst.msk [vmem:[%s353_s5] sm:$0xff] %vm159_vm1, %v156_v41 }
 0x178   :  { %165 = vsyncpa [#allocation3], 1 }

</bundles_post_ra>
